<compile_context>
chip_gen: v5e
topology: v5e:2x2
jax: 0.10.0
libtpu: 0.0.40
codegen_flags: <defaults>
</compile_context>

<pallas_src>
import jax
import jax.numpy as jnp
from jax.experimental import pallas as pl
from jax.experimental.pallas import tpu as pltpu


def _round_up(x, m):
    return ((x + m - 1) // m) * m


def parent_atten_kernel(hc_ref, wgT_ref, wvT_ref, bv_ref, out_ref):
    # hc_ref : (Bt, 2H)  packed [ht | ct] state rows for this row-block (f32)
    # wgT_ref: (2H, Hp)  Wg_linear.weight.T, output axis zero-padded to Hp (mult. of 128)
    # wvT_ref: (Hp, Vp)  Wv_linear.weight.T, zero-padded (rows >= H, cols >= V are 0)
    # bv_ref : (1,  Vp)  Wv_linear.bias, pad lanes = -1e30 (exp underflows to 0)
    # out_ref: (Bt, Vp)  lane-dense log-softmax output (valid region = [:, :V])

    # Gt = tanh(cat([ht, ct]) @ Wg^T) -- a single MXU push (2H = 64 <= MXU depth).
    g = jnp.tanh(jnp.dot(hc_ref[...], wgT_ref[...],
                         preferred_element_type=jnp.float32))

    # logits = Gt @ Wv^T + bv ; padded lanes end up at ~-1e30.
    logits = jnp.dot(g, wvT_ref[...],
                     preferred_element_type=jnp.float32) + bv_ref[...]

    # Numerically stable log_softmax along the lane-dense vocab axis.
    # (max is taken BEFORE exp; pad lanes rely on that ordering.)
    m = jnp.max(logits, axis=1, keepdims=True)
    shifted = logits - m
    lse = jnp.log(jnp.sum(jnp.exp(shifted), axis=1, keepdims=True))
    out_ref[...] = (shifted - lse).astype(out_ref.dtype)


def make_parent_atten(wg_weight, wv_weight, wv_bias, *, block_rows=256):
    """One-time parameter preparation + jitted forward functions.

    wg_weight : (H, 2H)  PyTorch Linear weight layout (out_features, in_features), no bias
    wv_weight : (V, H)
    wv_bias   : (V,)
    block_rows: rows of decode state per grid step (256 fills v6e/v7x MXU rows;
                use 128 to match v5e's 4x128x128 MXU geometry).

    Returns (forward, forward_batched, forward_batched_padded):
      forward(ht, ct)                   -> (1, V)   matches Parent_atten.forward
      forward_batched(hts, cts)         -> (B, V)   convenience (slices padding)
      forward_batched_padded(hts, cts)  -> (Bp, Vp) fast path: raw padded kernel
                                                    output, no wrapper slice
                                                    (consumer reads [:B, :V]).
    """
    H = wg_weight.shape[0]
    V = wv_weight.shape[0]
    assert wg_weight.shape == (H, 2 * H)
    assert block_rows % 8 == 0
    Hp = _round_up(H, 128)   # lane-dense hidden (Gt) width
    Vp = _round_up(V, 128)   # lane-dense vocab width

    # ---- one-time prep (NOT per call): split-free transposed, zero/neg-inf padded ----
    wgT = jnp.zeros((2 * H, Hp), jnp.float32).at[:, :H].set(
        jnp.asarray(wg_weight, jnp.float32).T)                               # (2H, Hp)
    wvT = jnp.zeros((Hp, Vp), jnp.float32).at[:H, :V].set(
        jnp.asarray(wv_weight, jnp.float32).T)                               # (Hp, Vp)
    bv = jnp.full((1, Vp), -1e30, jnp.float32).at[0, :V].set(
        jnp.asarray(wv_bias, jnp.float32))                                   # (1, Vp)

    def _raw(hts, cts):
        B = hts.shape[0]
        if B <= block_rows:
            Bt = _round_up(max(B, 1), 8)     # single block, rows padded to mult of 8
            Bp = Bt
        else:
            Bt = block_rows
            Bp = _round_up(B, Bt)

        # Pack [ht | ct] and row-pad in one fused XLA op (packed-hc input).
        hc = jnp.zeros((Bp, 2 * H), jnp.float32)
        hc = hc.at[:B, :H].set(hts.astype(jnp.float32))
        hc = hc.at[:B, H:].set(cts.astype(jnp.float32))

        grid = (Bp // Bt,)
        return pl.pallas_call(
            parent_atten_kernel,
            out_shape=jax.ShapeDtypeStruct((Bp, Vp), jnp.float32),
            grid=grid,
            in_specs=[
                # state rows advance with the grid
                pl.BlockSpec((Bt, 2 * H), lambda i: (i, 0)),
                # weights/bias: constant block index -> DMA'd once, stay resident
                pl.BlockSpec((2 * H, Hp), lambda i: (0, 0)),
                pl.BlockSpec((Hp, Vp), lambda i: (0, 0)),
                pl.BlockSpec((1, Vp), lambda i: (0, 0)),
            ],
            out_specs=pl.BlockSpec((Bt, Vp), lambda i: (i, 0)),
            compiler_params=pltpu.CompilerParams(
                dimension_semantics=("parallel",)),   # shard row-blocks over v7x's 2 TCs
        )(hc, wgT, wvT, bv)

    forward_batched_padded = jax.jit(_raw)

    def _sliced(hts, cts):
        return _raw(hts, cts)[:hts.shape[0], :V]

    forward_batched = jax.jit(_sliced)

    def forward(ht, ct):
        # Matches Parent_atten.forward: ht.view(1, -1), ct.view(1, -1)
        return forward_batched(ht.reshape(1, -1), ct.reshape(1, -1))

    return forward, forward_batched, forward_batched_padded


def _reference_forward_batched(hts, cts, wg_weight, wv_weight, wv_bias):
    """Pure-JAX reference (rows = independent states)."""
    hc = jnp.concatenate([hts, cts], axis=1)
    g = jnp.tanh(hc @ wg_weight.T)
    return jax.nn.log_softmax(g @ wv_weight.T + wv_bias, axis=1)


if __name__ == "__main__":
    hidden_dim = 32
    vocab_size = 2  # len(value_to_ix) = {'UNK', 'EOF'}

    key = jax.random.PRNGKey(0)
    k_wg, k_wv, k_bv, k_ht, k_ct, k_hb, k_cb, k_hl, k_cl = jax.random.split(key, 9)

    # Deterministic synthetic parameters (PyTorch-Linear-like uniform init).
    bound_g = 1.0 / jnp.sqrt(2.0 * hidden_dim)
    bound_v = 1.0 / jnp.sqrt(1.0 * hidden_dim)
    wg_weight = jax.random.uniform(
        k_wg, (hidden_dim, 2 * hidden_dim), jnp.float32, -bound_g, bound_g)
    wv_weight = jax.random.uniform(
        k_wv, (vocab_size, hidden_dim), jnp.float32, -bound_v, bound_v)
    wv_bias = jax.random.uniform(
        k_bv, (vocab_size,), jnp.float32, -bound_v, bound_v)

    forward, forward_batched, forward_batched_padded = make_parent_atten(
        wg_weight, wv_weight, wv_bias, block_rows=256)

    def reference(hts, cts):
        return _reference_forward_batched(hts, cts, wg_weight, wv_weight, wv_bias)

    # --- 1) single-step call, identical semantics to Parent_atten.forward ---
    ht = jax.random.normal(k_ht, (1, hidden_dim), jnp.float32)
    ct = jax.random.normal(k_ct, (1, hidden_dim), jnp.float32)
    yt = forward(ht, ct)
    jax.block_until_ready(yt)
    assert yt.shape == (1, vocab_size)
    assert jnp.allclose(yt, reference(ht, ct), atol=3e-5, rtol=1e-5), (yt, reference(ht, ct))

    # --- 2) small batch of independent (ht, ct) states in ONE pallas_call ---
    B = 8
    hts = jax.random.normal(k_hb, (B, hidden_dim), jnp.float32)
    cts = jax.random.normal(k_cb, (B, hidden_dim), jnp.float32)
    yb = forward_batched(hts, cts)
    jax.block_until_ready(yb)
    assert yb.shape == (B, vocab_size)
    assert jnp.allclose(yb, reference(hts, cts), atol=3e-5, rtol=1e-5)

    # --- 3) large batch: multi-block "parallel" grid, resident weights,
    #        padded fast path (no wrapper slice) ---
    BL = 512
    htl = jax.random.normal(k_hl, (BL, hidden_dim), jnp.float32)
    ctl = jax.random.normal(k_cl, (BL, hidden_dim), jnp.float32)
    yl = forward_batched_padded(htl, ctl)
    jax.block_until_ready(yl)
    assert yl.shape == (BL, 128)  # Vp = 128 lane-dense padded vocab
    assert jnp.allclose(yl[:, :vocab_size], reference(htl, ctl), atol=3e-5, rtol=1e-5)

    print("KERNEL_OK")
</pallas_src>

<mosaic_0001>
module attributes {stable_mosaic.version = 11 : i64} {
  func.func @parent_atten_kernel(%arg0: i32, %arg1: memref<8x64xf32, #tpu.memory_space<vmem>>, %arg2: memref<64x128xf32, #tpu.memory_space<vmem>>, %arg3: memref<128x128xf32, #tpu.memory_space<vmem>>, %arg4: memref<1x128xf32, #tpu.memory_space<vmem>>, %arg5: memref<8x128xf32, #tpu.memory_space<vmem>>) attributes {dimension_semantics = [#tpu.dimension_semantics<parallel>], iteration_bounds = array<i64: 1>, scalar_prefetch = 0 : i64, scratch_operands = 0 : i64, tpu.core_type = #tpu.core_type<tc>, window_params = [{transform_indices = @transform_0, window_bounds = array<i64: 8, 64>}, {pipeline_mode = #tpu.pipeline_mode<synchronous>, transform_indices = @transform_1, window_bounds = array<i64: 64, 128>}, {pipeline_mode = #tpu.pipeline_mode<synchronous>, transform_indices = @transform_2, window_bounds = array<i64: 128, 128>}, {pipeline_mode = #tpu.pipeline_mode<synchronous>, transform_indices = @transform_3, window_bounds = array<i64: 1, 128>}, {transform_indices = @transform_4, window_bounds = array<i64: 8, 128>}]} {
    %c0 = arith.constant 0 : index
    %c0_0 = arith.constant 0 : index
    %0 = vector.load %arg1[%c0, %c0_0] : memref<8x64xf32, #tpu.memory_space<vmem>>, vector<8x64xf32>
    %c0_1 = arith.constant 0 : index
    %c0_2 = arith.constant 0 : index
    %1 = vector.load %arg2[%c0_1, %c0_2] : memref<64x128xf32, #tpu.memory_space<vmem>>, vector<64x128xf32>
    %cst = arith.constant dense<0.000000e+00> : vector<8x128xf32>
    %2 = tpu.matmul %0, %1, %cst {dimension_numbers = #tpu.dot_dimension_numbers<[1], [0], [0], [1], [0, 0, 1, 1], [], []>} : vector<8x64xf32>, vector<64x128xf32>, vector<8x128xf32> -> vector<8x128xf32>
    %3 = math.tanh %2 : vector<8x128xf32>
    %c0_3 = arith.constant 0 : index
    %c0_4 = arith.constant 0 : index
    %4 = vector.load %arg3[%c0_3, %c0_4] : memref<128x128xf32, #tpu.memory_space<vmem>>, vector<128x128xf32>
    %cst_5 = arith.constant dense<0.000000e+00> : vector<8x128xf32>
    %5 = tpu.matmul %3, %4, %cst_5 {dimension_numbers = #tpu.dot_dimension_numbers<[1], [0], [0], [1], [0, 0, 1, 1], [], []>} : vector<8x128xf32>, vector<128x128xf32>, vector<8x128xf32> -> vector<8x128xf32>
    %c0_6 = arith.constant 0 : index
    %c0_7 = arith.constant 0 : index
    %6 = vector.load %arg4[%c0_6, %c0_7] : memref<1x128xf32, #tpu.memory_space<vmem>>, vector<1x128xf32>
    %7 = vector.broadcast %6 : vector<1x128xf32> to vector<8x128xf32>
    %8 = arith.addf %5, %7 : vector<8x128xf32>
    %cst_8 = arith.constant dense<0xFF800000> : vector<8xf32>
    %9 = vector.multi_reduction <maximumf>, %8, %cst_8 [1] : vector<8x128xf32> to vector<8xf32>
    %10 = vector.shape_cast %9 : vector<8xf32> to vector<8x1xf32>
    %11 = vector.broadcast %10 : vector<8x1xf32> to vector<8x128xf32>
    %12 = arith.subf %8, %11 : vector<8x128xf32>
    %13 = math.exp %12 : vector<8x128xf32>
    %cst_9 = arith.constant dense<0.000000e+00> : vector<8xf32>
    %14 = vector.multi_reduction <add>, %13, %cst_9 [1] : vector<8x128xf32> to vector<8xf32>
    %15 = vector.shape_cast %14 : vector<8xf32> to vector<8x1xf32>
    %16 = math.log %15 : vector<8x1xf32>
    %17 = vector.broadcast %16 : vector<8x1xf32> to vector<8x128xf32>
    %18 = arith.subf %12, %17 : vector<8x128xf32>
    %c0_10 = arith.constant 0 : index
    %c0_11 = arith.constant 0 : index
    %19 = vector.load %arg5[%c0_10, %c0_11] : memref<8x128xf32, #tpu.memory_space<vmem>>, vector<8x128xf32>
    tpu.vector_store %arg5[%c0_10, %c0_11], %18 {strides = array<i32>} : memref<8x128xf32, #tpu.memory_space<vmem>>, vector<8x128xf32>,
    return
  }
  func.func @transform_0(%arg0: i32) -> (i32, i32) {
    %c0_i32 = arith.constant 0 : i32
    %c0_i32_0 = arith.constant 0 : i32
    return %arg0, %c0_i32 : i32, i32
  }
  func.func @transform_1(%arg0: i32) -> (i32, i32) {
    %c0_i32 = arith.constant 0 : i32
    %c0_i32_0 = arith.constant 0 : i32
    %c0_i32_1 = arith.constant 0 : i32
    return %c0_i32, %c0_i32_0 : i32, i32
  }
  func.func @transform_2(%arg0: i32) -> (i32, i32) {
    %c0_i32 = arith.constant 0 : i32
    %c0_i32_0 = arith.constant 0 : i32
    %c0_i32_1 = arith.constant 0 : i32
    return %c0_i32, %c0_i32_0 : i32, i32
  }
  func.func @transform_3(%arg0: i32) -> (i32, i32) {
    %c0_i32 = arith.constant 0 : i32
    %c0_i32_0 = arith.constant 0 : i32
    %c0_i32_1 = arith.constant 0 : i32
    return %c0_i32, %c0_i32_0 : i32, i32
  }
  func.func @transform_4(%arg0: i32) -> (i32, i32) {
    %c0_i32 = arith.constant 0 : i32
    %c0_i32_0 = arith.constant 0 : i32
    return %arg0, %c0_i32 : i32, i32
  }
}

</mosaic_0001>

<bundles_post_ra>
// kernel: _sliced.1
= control target key start
LH: loop header
LB: loop body
LE: loop exit
PB: predicated region body
PF: predicated region fallthrough
CT: control target
= control target key end

     0   :  { %9 = vsyncpa [#allocation3], 0  ;;  %s248_s0 = inlined_call_operand.vmem [shape: f32[8,64], index: 0, kind: input, shape index: {}]   ;;  %s249_s1 = inlined_call_operand.hbm [shape: f32[64,128], index: 1, kind: input, shape index: {}]   ;;  %s250_s2 = inlined_call_operand.hbm [shape: f32[128,128], index: 2, kind: input, shape index: {}]   ;;  %s251_s3 = inlined_call_operand.vmem [shape: f32[1,128], index: 3, kind: input, shape index: {}]   ;;  %s252_s4 = inlined_call_operand.vmem [shape: f32[8,128], index: 4, kind: output, shape index: {}]  }
   0x1   :  { %s17_s17 = sshll.u32 %s249_s1, 4  ;;  %s18_s17 = int_to_ptr.hbm [resolvable:$true] %s17_s17 }
   0x2   :  { %10 = vsyncpa [#allocation5], 0  ;;  %s204_s18 = smov [#allocation2]   ;;  %s30_s22 = sshll.u32 %s250_s2, 4  ;;  %s31_s22 = int_to_ptr.hbm [resolvable:$true] %s30_s22 }
   0x3   :  { %s19_s19 = sshll.u32 %s204_s18, 4  ;;  %s205_s23 = smov 128   ;;  %s20_s19 = int_to_ptr.vmem [resolvable:$true] %s19_s19 }
   0x4   :  { %s206_s24 = smov 8   ;;  %s207_s25 = smov [#allocation4]  }
   0x5   :  { %25 = dma.hbm_to_vmem [thread:$0]  %s18_s17, 1024, %s20_s19, [#allocation3], %s205_s23, %s205_s23, %s206_s24  }
   0x6   :  { %s32_s26 = sshll.u32 %s207_s25, 4  ;;  %s33_s26 = int_to_ptr.vmem [resolvable:$true] %s32_s26 }
   0x7   :  { %38 = dma.hbm_to_vmem [thread:$0]  %s31_s22, 2048, %s33_s26, [#allocation5], %s205_s23, %s205_s23, %s206_s24  }
   0x8   :  { %200 = dma.done.wait [#allocation3], 1024  }
   0x9   :  { %201 = vsyncadd [#allocation3], 4294966272 }
   0xa   :  { %202 = dma.done.wait [#allocation5], 2048  }
   0xb   :  { %203 = vsyncadd [#allocation5], 4294965248  ;;  %v57_v0 = vld [vmem:[#allocation2 + $0x38] sm:$0xff]  ;;  %v56_v1 = vld [vmem:[#allocation2 + $0x30] sm:$0xff]  ;;  %vm58_vm0 = vcmask 523264  }
   0xc   :  { %70 = vmatpush.msra.mxu0 %v57_v0  ;;  %v55_v2 = vld [vmem:[#allocation2 + $0x28] sm:$0xff]  ;;  %v98_v3 = vld [vmem:[#allocation4 + $0x78] sm:$0xff]  ;;  %v97_v4 = vld [vmem:[#allocation4 + $0x70] sm:$0xff] }
   0xd   :  { %v54_v5 = vld [vmem:[#allocation2 + $0x20] sm:$0xff]  ;;  %103 = vmatpush.msra.mxu1 %v98_v3  ;;  %v96_v6 = vld [vmem:[#allocation4 + $0x68] sm:$0xff]  ;;  %v53_v7 = vld [vmem:[#allocation2 + $0x18] sm:$0xff] }
   0xe   :  { %71 = vmatpush.msra.mxu0 %v56_v1  ;;  %v95_v8 = vld [vmem:[#allocation4 + $0x60] sm:$0xff]  ;;  %v52_v9 = vld [vmem:[#allocation2 + $0x10] sm:$0xff]  ;;  %v94_v10 = vld [vmem:[#allocation4 + $0x58] sm:$0xff] }
   0xf   :  { %104 = vmatpush.msra.mxu1 %v97_v4  ;;  %v51_v11 = vld [vmem:[#allocation2 + $0x8] sm:$0xff]  ;;  %v93_v12 = vld [vmem:[#allocation4 + $0x50] sm:$0xff]  ;;  %v50_v13 = vld [vmem:[#allocation2] sm:$0xff] }
  0x10   :  { %72 = vmatpush.msra.mxu0 %v55_v2  ;;  %v49_v14 = vld [vmem:[%s248_s0] sm:$0xff]  ;;  %v92_v15 = vld [vmem:[#allocation4 + $0x48] sm:$0xff]  ;;  %v90_v17 = vld [vmem:[#allocation4 + $0x38] sm:$0xff] }
  0x11   :  { %105 = vmatpush.msra.mxu1 %v96_v6  ;;  %v91_v16 = vld [vmem:[#allocation4 + $0x40] sm:$0xff]  ;;  %v89_v18 = vld [vmem:[#allocation4 + $0x30] sm:$0xff]  ;;  %v88_v19 = vld [vmem:[#allocation4 + $0x28] sm:$0xff] }
  0x12   :  { %73 = vmatpush.msra.mxu0 %v54_v5  ;;  %v87_v20 = vld [vmem:[#allocation4 + $0x20] sm:$0xff]  ;;  %v86_v21 = vld [vmem:[#allocation4 + $0x18] sm:$0xff]  ;;  %v85_v22 = vld [vmem:[#allocation4 + $0x10] sm:$0xff] }
  0x13   :  { %106 = vmatpush.msra.mxu1 %v95_v8  ;;  %v84_v23 = vld [vmem:[#allocation4 + $0x8] sm:$0xff]  ;;  %v83_v24 = vld [vmem:[#allocation4] sm:$0xff] }
  0x14   :  { %74 = vmatpush.msra.mxu0 %v53_v7  ;;  %v145_v27 = vld [vmem:[%s251_s3] ss:$0 sm:$0xff] }
  0x15   :  { %107 = vmatpush.msra.mxu1 %v94_v10 }
  0x16   :  { %75 = vmatpush.msra.mxu0 %v52_v9 }
  0x17   :  { %108 = vmatpush.msra.mxu1 %v93_v12 }
  0x18   :  { %76 = vmatpush.msra.mxu0 %v51_v11 }
  0x19   :  { %109 = vmatpush.msra.mxu1 %v92_v15 }
  0x1a   :  { %77 = vmatpush.msra.mxu0 %v50_v13 }
  0x1b   :  { %140 = vmatmul.msk.f32.vlgmr.msra.gmra.mxu0 %vm58_vm0, %v49_v14  ;;  %110 = vmatpush.msra.mxu1 %v91_v16 }
  0x1d   :  { %111 = vmatpush.msra.mxu1 %v90_v17 }
  0x1f   :  { %112 = vmatpush.msra.mxu1 %v89_v18 }
  0x21   :  { %113 = vmatpush.msra.mxu1 %v88_v19 }
  0x23   :  { %114 = vmatpush.msra.mxu1 %v87_v20 }
  0x25   :  { %115 = vmatpush.msra.mxu1 %v86_v21 }
  0x27   :  { %116 = vmatpush.msra.mxu1 %v85_v22 }
  0x29   :  { %117 = vmatpush.msra.mxu1 %v84_v23 }
  0x2b   :  { %118 = vmatpush.msra.mxu1 %v83_v24 }
  0x98   :  { %v79_v25 = vpop.f32.mrf.mxu0 }
  0x99   :  { %146 = vtanh.f32 %v79_v25 }
  0x9f   :  { %v147_v26 = vpop.eup %146 }
  0xa0   :  { %119 = vmatmul.f32.vlgmr.msra.gmra.mxu1 %v147_v26 }
 0x11d   :  { %v120_v28 = vpop.f32.mrf.mxu1 }
 0x11e   :  { %v121_v29 = vadd.f32 %v145_v27, %v120_v28 }
 0x120   :  { %123 = vmax.xlane.f32.xlu0 %v121_v29 }
 0x193   :  { %v124_v30 = vpop.xlane.xlu0 %123 }
 0x194   :  { %v125_v31 = vsub.f32 %v121_v29, %v124_v30 }
 0x196   :  { %v126_v32 = vmul.f32 1.442695, %v125_v31 }
 0x198   :  { %148 = vpow2.f32 %v126_v32 }
 0x19e   :  { %v149_v33 = vpop.eup %148 }
 0x19f   :  { %128 = vadd.xlane.f32.xlu0 %v149_v33 }
 0x212   :  { %v129_v34 = vpop.xlane.xlu0 %128 }
 0x213   :  { %150 = vlog2.f32 %v129_v34 }
 0x219   :  { %v151_v35 = vpop.eup %150 }
 0x21a   :  { %v131_v36 = vmul.f32 0.6931472, %v151_v35 }
 0x21c   :  { %v132_v37 = vsub.f32 %v125_v31, %v131_v36 }
 0x21e   :  { %133 = vst [vmem:[%s252_s4] sm:$0xff] %v132_v37 }
 0x21f   :  { %138 = vsyncpa [#allocation3], 1 }
 0x220   :  { %139 = vsyncpa [#allocation5], 1 }

</bundles_post_ra>
